<compile_context>
chip_gen: v7x
topology: tpu7x:2x2x1
jax: 0.10.0
libtpu: 0.0.40
codegen_flags: <defaults>
</compile_context>

<pallas_src>
import jax
import jax.numpy as jnp
from jax.experimental import pallas as pl
from jax.experimental.pallas import tpu as pltpu

# ----------------------- configuration (small, synthetic) -----------------------
B = 8                              # batch
D_IN = 16                          # input feature dim
EXPERT_HIDDEN = [D_IN, 32, 32]     # experts_hidden_units -> 2-layer MLP
NUM_SPECIFIC = 2                   # num_specific_experts
NUM_SHARED = 2                     # num_shared_experts
NUM_TASKS = 2                      # num_tasks
GATE_HIDDEN = [D_IN, NUM_SPECIFIC + NUM_SHARED]   # gates_hidden_units -> 1-layer MLP
TOWER_HIDDEN = [EXPERT_HIDDEN[-1], 16]            # towers_hidden_units -> 1-layer MLP

E_H1 = EXPERT_HIDDEN[1]
E_OUT = EXPERT_HIDDEN[2]
G_OUT = GATE_HIDDEN[1]
T_OUT = TOWER_HIDDEN[1]

N_EXPERTS = NUM_SHARED + NUM_TASKS * NUM_SPECIFIC      # 6; order: shared, task1, task2
GATE_COLS = NUM_TASKS * G_OUT                          # 8  (h1 columns 0..7)
W1_WIDTH = GATE_COLS + N_EXPERTS * E_H1                # 200 (no zero padding)
N_BLOCKS = NUM_TASKS * NUM_SPECIFIC                    # 4 combination blocks
SPEC_WIDTH = N_BLOCKS * E_OUT                          # 128
H2_WIDTH = 2 * SPEC_WIDTH                              # 256: [specific | shared-duplicated]
TW_OUT = NUM_TASKS * T_OUT                             # 32
OUT_PAD = 128                                          # lane-dense output slab width
TAIL_ROWS = SPEC_WIDTH + TW_OUT                        # 160: expanded tower + head weights
AUX_ROWS = 24                                          # 8 bias rows + 8 (N128) + 8 (D128)
TB = B                                                 # full-batch tile; for production batches
                                                       # split TB across the grid (v7x 2nd TC)

# Static safety checks (mirror the PyTorch indexing quirk safely).
assert NUM_SPECIFIC <= NUM_SHARED, "forward indexes shared[i] for i < num_specific"
assert NUM_TASKS == 2
assert NUM_TASKS <= OUT_PAD
assert B % TB == 0 and TB % 8 == 0


# ------------------------------- Pallas kernel ----------------------------------
def cgc_kernel(x_ref, w1_ref, w2_ref, wt_ref, aux_ref, out_ref):
    f32 = jnp.float32
    x = x_ref[...]                                                  # [TB, D_IN] f32

    # --- layer 1: all 6 experts AND both gates in one matmul (gates at cols 0..7) ---
    w1 = w1_ref[...].astype(f32)                                    # bf16 -> f32 (tiny)
    b1 = aux_ref[0:1, 0:W1_WIDTH]
    h1 = jnp.maximum(jnp.dot(x, w1, preferred_element_type=f32) + b1, 0.0)   # [TB, 200]

    # --- per-task softmax of the gate columns, broadcast onto the 4 combination
    #     blocks via two tiny 0/1-matrix matmuls (MXU), denom reciprocal on the EUP ---
    e = jnp.exp(h1[:, 0:GATE_COLS])                                 # [TB, 8]
    numer = jnp.dot(e, aux_ref[8:16, 0:SPEC_WIDTH],
                    preferred_element_type=f32)                     # [TB, 128]
    denom = jnp.dot(e, aux_ref[16:24, 0:SPEC_WIDTH],
                    preferred_element_type=f32)                     # [TB, 128] (>= num_tasks>0)
    gate_b = numer * pl.reciprocal(denom, approx=True)              # [TB, 128]

    # --- layer 2: all experts, outputs expanded to [specific | shared-dup] halves ---
    w2 = w2_ref[...].astype(f32)
    b2 = aux_ref[1:2, :]
    h2 = jnp.maximum(jnp.dot(h1, w2, preferred_element_type=f32) + b2, 0.0)  # [TB, 256]
    v = h2[:, 0:SPEC_WIDTH] + h2[:, SPEC_WIDTH:H2_WIDTH]            # [TB, 128] aligned halves

    # --- gated combination folded into the block-expanded tower matmul ---
    tw = wt_ref[0:SPEC_WIDTH, 0:TW_OUT].astype(f32)                 # [128, 32]
    twb = aux_ref[2:3, 0:TW_OUT]
    ht = jnp.maximum(jnp.dot(v * gate_b, tw, preferred_element_type=f32) + twb, 0.0)

    # --- shared combination head, both tasks, lane-dense 128-wide output slab ---
    cw = wt_ref[SPEC_WIDTH:TAIL_ROWS, :].astype(f32)                # [32, 128]
    cb = aux_ref[3:4, 0:OUT_PAD]
    y = jax.nn.sigmoid(jnp.dot(ht, cw, preferred_element_type=f32) + cb)
    out_ref[...] = y.astype(out_ref.dtype)                          # [TB, OUT_PAD]


# --------------------------------- wrapper --------------------------------------
@jax.jit
def cgc_forward(x, fused):
    w1f, w2f, wt, aux = fused
    grid = (B // TB,)
    in_specs = [
        pl.BlockSpec((TB, D_IN), lambda b: (b, 0)),
        pl.BlockSpec(w1f.shape, lambda b: (0, 0)),
        pl.BlockSpec(w2f.shape, lambda b: (0, 0)),
        pl.BlockSpec(wt.shape, lambda b: (0, 0)),
        pl.BlockSpec(aux.shape, lambda b: (0, 0)),
    ]
    out_specs = pl.BlockSpec((TB, OUT_PAD), lambda b: (b, 0))
    out_shape = jax.ShapeDtypeStruct((B, OUT_PAD), jnp.float32)

    flops = 2 * B * (D_IN * W1_WIDTH + W1_WIDTH * H2_WIDTH
                     + 2 * GATE_COLS * SPEC_WIDTH
                     + SPEC_WIDTH * TW_OUT + TW_OUT * OUT_PAD)
    transcendentals = B * (GATE_COLS + SPEC_WIDTH + OUT_PAD)
    bytes_accessed = (4 * B * (D_IN + OUT_PAD)
                      + 2 * (D_IN * W1_WIDTH + W1_WIDTH * H2_WIDTH + TAIL_ROWS * OUT_PAD)
                      + 4 * AUX_ROWS * H2_WIDTH)

    out = pl.pallas_call(
        cgc_kernel,
        grid_spec=pltpu.PrefetchScalarGridSpec(
            num_scalar_prefetch=0,
            grid=grid,
            in_specs=in_specs,
            out_specs=out_specs,
        ),
        out_shape=out_shape,
        compiler_params=pltpu.CompilerParams(
            dimension_semantics=("parallel",)),
        cost_estimate=pl.CostEstimate(
            flops=flops, transcendentals=transcendentals,
            bytes_accessed=bytes_accessed),
    )(x, w1f, w2f, wt, aux)
    # Slice the lane-dense slab back to the two [B, 1] task outputs.
    return out[:, 0:1], out[:, 1:2]


# --------------------- parameter creation (original structure) -------------------
def init_params(key):
    keys = jax.random.split(key, 32)
    k = iter(keys)

    def lin(kk, fan_in, fan_out, *lead):
        scale = 1.0 / jnp.sqrt(jnp.float32(fan_in))
        return jax.random.uniform(kk, lead + (fan_in, fan_out),
                                  jnp.float32, -scale, scale)

    shW1 = lin(next(k), D_IN, E_H1, NUM_SHARED)
    shb1 = lin(next(k), D_IN, E_H1, NUM_SHARED)[:, :1, :]
    shW2 = lin(next(k), E_H1, E_OUT, NUM_SHARED)
    shb2 = lin(next(k), E_H1, E_OUT, NUM_SHARED)[:, :1, :]
    t1W1 = lin(next(k), D_IN, E_H1, NUM_SPECIFIC)
    t1b1 = lin(next(k), D_IN, E_H1, NUM_SPECIFIC)[:, :1, :]
    t1W2 = lin(next(k), E_H1, E_OUT, NUM_SPECIFIC)
    t1b2 = lin(next(k), E_H1, E_OUT, NUM_SPECIFIC)[:, :1, :]
    t2W1 = lin(next(k), D_IN, E_H1, NUM_SPECIFIC)
    t2b1 = lin(next(k), D_IN, E_H1, NUM_SPECIFIC)[:, :1, :]
    t2W2 = lin(next(k), E_H1, E_OUT, NUM_SPECIFIC)
    t2b2 = lin(next(k), E_H1, E_OUT, NUM_SPECIFIC)[:, :1, :]
    gW = lin(next(k), D_IN, G_OUT, NUM_TASKS)
    gb = lin(next(k), D_IN, G_OUT, NUM_TASKS)[:, :1, :]
    twW = lin(next(k), E_OUT, T_OUT, NUM_TASKS)
    twb = lin(next(k), E_OUT, T_OUT, NUM_TASKS)[:, :1, :]
    cW = lin(next(k), T_OUT, 1)
    cb = lin(next(k), T_OUT, 1)[:1, :]

    return (shW1, shb1, shW2, shb2,
            t1W1, t1b1, t1W2, t1b2,
            t2W1, t2b1, t2W2, t2b2,
            gW, gb, twW, twb, cW, cb)


# --------------------- fuse per-expert params into lane-dense slabs --------------
def fuse_params(params):
    (shW1, shb1, shW2, shb2,
     t1W1, t1b1, t1W2, t1b2,
     t2W1, t2b1, t2W2, t2b2,
     gW, gb, twW, twb, cW, cb) = params

    spW2 = [t1W2, t2W2]
    spb2 = [t1b2, t2b2]

    def h1_col(e):  # expert e in order: shared[0..], task1[0..], task2[0..]
        return GATE_COLS + e * E_H1

    exp_W1 = ([shW1[i] for i in range(NUM_SHARED)]
              + [t1W1[i] for i in range(NUM_SPECIFIC)]
              + [t2W1[i] for i in range(NUM_SPECIFIC)])
    exp_b1 = ([shb1[i] for i in range(NUM_SHARED)]
              + [t1b1[i] for i in range(NUM_SPECIFIC)]
              + [t2b1[i] for i in range(NUM_SPECIFIC)])

    # ---- layer 1 [D_IN, 200]: gate weights folded into cols 0..7, experts after ----
    W1f = jnp.zeros((D_IN, W1_WIDTH), jnp.float32)
    b1f = jnp.zeros((1, W1_WIDTH), jnp.float32)
    for t in range(NUM_TASKS):
        c = t * G_OUT
        W1f = W1f.at[:, c:c + G_OUT].set(gW[t])
        b1f = b1f.at[:, c:c + G_OUT].set(gb[t])
    for e in range(N_EXPERTS):
        c = h1_col(e)
        W1f = W1f.at[:, c:c + E_H1].set(exp_W1[e])
        b1f = b1f.at[:, c:c + E_H1].set(exp_b1[e])

    # ---- layer 2 [200, 256]: block j = task t, specific i; cols [specific | shared-dup] ----
    W2f = jnp.zeros((W1_WIDTH, H2_WIDTH), jnp.float32)
    b2f = jnp.zeros((1, H2_WIDTH), jnp.float32)
    for j in range(N_BLOCKS):
        t, i = j // NUM_SPECIFIC, j % NUM_SPECIFIC
        sp_e = NUM_SHARED + t * NUM_SPECIFIC + i
        r = h1_col(sp_e)
        W2f = W2f.at[r:r + E_H1, j * E_OUT:(j + 1) * E_OUT].set(spW2[t][i])
        b2f = b2f.at[:, j * E_OUT:(j + 1) * E_OUT].set(spb2[t][i])
        r = h1_col(i)  # shared expert i, duplicated per block
        c = SPEC_WIDTH + j * E_OUT
        W2f = W2f.at[r:r + E_H1, c:c + E_OUT].set(shW2[i])
        b2f = b2f.at[:, c:c + E_OUT].set(shb2[i])

    # ---- softmax numerator / denominator broadcast matrices (0/1, exact) ----
    N128 = jnp.zeros((GATE_COLS, SPEC_WIDTH), jnp.float32)
    D128 = jnp.zeros((GATE_COLS, SPEC_WIDTH), jnp.float32)
    for j in range(N_BLOCKS):
        t, i = j // NUM_SPECIFIC, j % NUM_SPECIFIC
        N128 = N128.at[t * G_OUT + i, j * E_OUT:(j + 1) * E_OUT].set(1.0)
        D128 = D128.at[t * G_OUT:(t + 1) * G_OUT, j * E_OUT:(j + 1) * E_OUT].set(1.0)

    # ---- expanded tower weights [128, 32] (combination matrix pre-folded) + head [32, 128] ----
    twWf = jnp.zeros((SPEC_WIDTH, TW_OUT), jnp.float32)
    twbf = jnp.zeros((1, TW_OUT), jnp.float32)
    for j in range(N_BLOCKS):
        t = j // NUM_SPECIFIC
        twWf = twWf.at[j * E_OUT:(j + 1) * E_OUT, t * T_OUT:(t + 1) * T_OUT].set(twW[t])
    for t in range(NUM_TASKS):
        twbf = twbf.at[:, t * T_OUT:(t + 1) * T_OUT].set(twb[t])
    cWf = jnp.zeros((TW_OUT, OUT_PAD), jnp.float32)
    cbf = jnp.zeros((1, OUT_PAD), jnp.float32)
    for t in range(NUM_TASKS):
        cWf = cWf.at[t * T_OUT:(t + 1) * T_OUT, t:t + 1].set(cW)
        cbf = cbf.at[:, t:t + 1].set(cb)

    # ---- pack into 4 operands: bf16 weight slabs + one f32 aux slab (biases + 0/1 mats) ----
    Wt = jnp.zeros((TAIL_ROWS, OUT_PAD), jnp.float32)
    Wt = Wt.at[0:SPEC_WIDTH, 0:TW_OUT].set(twWf)
    Wt = Wt.at[SPEC_WIDTH:TAIL_ROWS, :].set(cWf)

    aux = jnp.zeros((AUX_ROWS, H2_WIDTH), jnp.float32)
    aux = aux.at[0, 0:W1_WIDTH].set(b1f[0])
    aux = aux.at[1, :].set(b2f[0])
    aux = aux.at[2, 0:TW_OUT].set(twbf[0])
    aux = aux.at[3, 0:OUT_PAD].set(cbf[0])
    aux = aux.at[8:16, 0:SPEC_WIDTH].set(N128)
    aux = aux.at[16:24, 0:SPEC_WIDTH].set(D128)

    return (W1f.astype(jnp.bfloat16), W2f.astype(jnp.bfloat16),
            Wt.astype(jnp.bfloat16), aux)


# ------------------------------ pure-JAX reference -------------------------------
def cgc_reference(x, params):
    (shW1, shb1, shW2, shb2,
     t1W1, t1b1, t1W2, t1b2,
     t2W1, t2b1, t2W2, t2b2,
     gW, gb, twW, twb, cW, cb) = params

    def expert(i, W1, b1, W2, b2):
        h = jax.nn.relu(x @ W1[i] + b1[i])
        return jax.nn.relu(h @ W2[i] + b2[i])

    shared = [expert(i, shW1, shb1, shW2, shb2) for i in range(NUM_SHARED)]
    task1 = [expert(i, t1W1, t1b1, t1W2, t1b2) for i in range(NUM_SPECIFIC)]
    task2 = [expert(i, t2W1, t2b1, t2W2, t2b2) for i in range(NUM_SPECIFIC)]

    def gate(t):
        return jax.nn.softmax(jax.nn.relu(x @ gW[t] + gb[t]), axis=1)

    g1, g2 = gate(0), gate(1)
    comb1 = sum(g1[:, i:i + 1] * task1[i] for i in range(NUM_SPECIFIC)) + \
            sum(g1[:, i:i + 1] * shared[i] for i in range(NUM_SPECIFIC))
    comb2 = sum(g2[:, i:i + 1] * task2[i] for i in range(NUM_SPECIFIC)) + \
            sum(g2[:, i:i + 1] * shared[i] for i in range(NUM_SPECIFIC))

    def head(t, comb):
        h = jax.nn.relu(comb @ twW[t] + twb[t])
        return jax.nn.sigmoid(h @ cW + cb)

    return head(0, comb1), head(1, comb2)


# ------------------------------------ main ---------------------------------------
if __name__ == "__main__":
    key = jax.random.PRNGKey(0)
    kx, kp = jax.random.split(key)
    x = jax.random.normal(kx, (B, D_IN), jnp.float32)
    params = init_params(kp)
    fused = fuse_params(params)

    out1, out2 = cgc_forward(x, fused)
    jax.block_until_ready((out1, out2))

    ref1, ref2 = cgc_reference(x, params)
    assert out1.shape == (B, 1) and out2.shape == (B, 1)
    # Tolerance accounts for bf16 weight storage + EUP approx reciprocal in the softmax
    # (both intentional perf choices); outputs are sigmoid-bounded in (0, 1).
    assert jnp.allclose(out1, ref1, atol=2e-2, rtol=2e-2)
    assert jnp.allclose(out2, ref2, atol=2e-2, rtol=2e-2)

    print("KERNEL_OK")
</pallas_src>

<mosaic_0001>
module attributes {stable_mosaic.version = 11 : i64} {
  func.func @cgc_kernel(%arg0: i32, %arg1: memref<8x16xf32, #tpu.memory_space<vmem>>, %arg2: memref<16x200xbf16, #tpu.memory_space<vmem>>, %arg3: memref<200x256xbf16, #tpu.memory_space<vmem>>, %arg4: memref<160x128xbf16, #tpu.memory_space<vmem>>, %arg5: memref<24x256xf32, #tpu.memory_space<vmem>>, %arg6: memref<8x128xf32, #tpu.memory_space<vmem>>) attributes {dimension_semantics = [#tpu.dimension_semantics<parallel>], iteration_bounds = array<i64: 1>, scalar_prefetch = 0 : i64, scratch_operands = 0 : i64, tpu.core_type = #tpu.core_type<tc>, window_params = [{transform_indices = @transform_0, window_bounds = array<i64: 8, 16>}, {pipeline_mode = #tpu.pipeline_mode<synchronous>, transform_indices = @transform_1, window_bounds = array<i64: 16, 200>}, {pipeline_mode = #tpu.pipeline_mode<synchronous>, transform_indices = @transform_2, window_bounds = array<i64: 200, 256>}, {pipeline_mode = #tpu.pipeline_mode<synchronous>, transform_indices = @transform_3, window_bounds = array<i64: 160, 128>}, {pipeline_mode = #tpu.pipeline_mode<synchronous>, transform_indices = @transform_4, window_bounds = array<i64: 24, 256>}, {transform_indices = @transform_5, window_bounds = array<i64: 8, 128>}]} {
    %c0 = arith.constant 0 : index
    %c0_0 = arith.constant 0 : index
    %0 = vector.load %arg1[%c0, %c0_0] : memref<8x16xf32, #tpu.memory_space<vmem>>, vector<8x16xf32>
    %c0_1 = arith.constant 0 : index
    %c0_2 = arith.constant 0 : index
    %1 = vector.load %arg2[%c0_1, %c0_2] : memref<16x200xbf16, #tpu.memory_space<vmem>>, vector<16x200xbf16>
    %2 = arith.extf %1 : vector<16x200xbf16> to vector<16x200xf32>
    %c0_3 = arith.constant 0 : index
    %c0_4 = arith.constant 0 : index
    %3 = vector.load %arg5[%c0_3, %c0_4] : memref<24x256xf32, #tpu.memory_space<vmem>>, vector<1x200xf32>
    %cst = arith.constant dense<0.000000e+00> : vector<8x200xf32>
    %4 = tpu.matmul %0, %2, %cst {dimension_numbers = #tpu.dot_dimension_numbers<[1], [0], [0], [1], [0, 0, 1, 1], [], []>} : vector<8x16xf32>, vector<16x200xf32>, vector<8x200xf32> -> vector<8x200xf32>
    %5 = vector.broadcast %3 : vector<1x200xf32> to vector<8x200xf32>
    %6 = arith.addf %4, %5 : vector<8x200xf32>
    %cst_5 = arith.constant 0.000000e+00 : f32
    %7 = vector.broadcast %cst_5 : f32 to vector<8x200xf32>
    %8 = arith.maximumf %6, %7 : vector<8x200xf32>
    %9 = vector.extract_strided_slice %8 {offsets = [0, 0], sizes = [8, 8], strides = [1, 1]} : vector<8x200xf32> to vector<8x8xf32>
    %10 = math.exp %9 : vector<8x8xf32>
    %c8 = arith.constant 8 : index
    %c0_6 = arith.constant 0 : index
    %11 = vector.load %arg5[%c8, %c0_6] : memref<24x256xf32, #tpu.memory_space<vmem>>, vector<8x128xf32>
    %cst_7 = arith.constant dense<0.000000e+00> : vector<8x128xf32>
    %12 = tpu.matmul %10, %11, %cst_7 {dimension_numbers = #tpu.dot_dimension_numbers<[1], [0], [0], [1], [0, 0, 1, 1], [], []>} : vector<8x8xf32>, vector<8x128xf32>, vector<8x128xf32> -> vector<8x128xf32>
    %c16 = arith.constant 16 : index
    %c0_8 = arith.constant 0 : index
    %13 = vector.load %arg5[%c16, %c0_8] : memref<24x256xf32, #tpu.memory_space<vmem>>, vector<8x128xf32>
    %cst_9 = arith.constant dense<0.000000e+00> : vector<8x128xf32>
    %14 = tpu.matmul %10, %13, %cst_9 {dimension_numbers = #tpu.dot_dimension_numbers<[1], [0], [0], [1], [0, 0, 1, 1], [], []>} : vector<8x8xf32>, vector<8x128xf32>, vector<8x128xf32> -> vector<8x128xf32>
    %15 = tpu.reciprocal %14 {approx = true} : vector<8x128xf32> -> vector<8x128xf32>
    %16 = arith.mulf %12, %15 : vector<8x128xf32>
    %c0_10 = arith.constant 0 : index
    %c0_11 = arith.constant 0 : index
    %17 = vector.load %arg3[%c0_10, %c0_11] : memref<200x256xbf16, #tpu.memory_space<vmem>>, vector<200x256xbf16>
    %18 = arith.extf %17 : vector<200x256xbf16> to vector<200x256xf32>
    %c1 = arith.constant 1 : index
    %c0_12 = arith.constant 0 : index
    %19 = vector.load %arg5[%c1, %c0_12] : memref<24x256xf32, #tpu.memory_space<vmem>>, vector<1x256xf32>
    %cst_13 = arith.constant dense<0.000000e+00> : vector<8x256xf32>
    %20 = tpu.matmul %8, %18, %cst_13 {dimension_numbers = #tpu.dot_dimension_numbers<[1], [0], [0], [1], [0, 0, 1, 1], [], []>} : vector<8x200xf32>, vector<200x256xf32>, vector<8x256xf32> -> vector<8x256xf32>
    %21 = vector.broadcast %19 : vector<1x256xf32> to vector<8x256xf32>
    %22 = arith.addf %20, %21 : vector<8x256xf32>
    %cst_14 = arith.constant 0.000000e+00 : f32
    %23 = vector.broadcast %cst_14 : f32 to vector<8x256xf32>
    %24 = arith.maximumf %22, %23 : vector<8x256xf32>
    %25 = vector.extract_strided_slice %24 {offsets = [0, 0], sizes = [8, 128], strides = [1, 1]} : vector<8x256xf32> to vector<8x128xf32>
    %26 = vector.extract_strided_slice %24 {offsets = [0, 128], sizes = [8, 128], strides = [1, 1]} : vector<8x256xf32> to vector<8x128xf32>
    %27 = arith.addf %25, %26 : vector<8x128xf32>
    %c0_15 = arith.constant 0 : index
    %c0_16 = arith.constant 0 : index
    %28 = vector.load %arg4[%c0_15, %c0_16] : memref<160x128xbf16, #tpu.memory_space<vmem>>, vector<128x32xbf16>
    %29 = arith.extf %28 : vector<128x32xbf16> to vector<128x32xf32>
    %c2 = arith.constant 2 : index
    %c0_17 = arith.constant 0 : index
    %30 = vector.load %arg5[%c2, %c0_17] : memref<24x256xf32, #tpu.memory_space<vmem>>, vector<1x32xf32>
    %31 = arith.mulf %27, %16 : vector<8x128xf32>
    %cst_18 = arith.constant dense<0.000000e+00> : vector<8x32xf32>
    %32 = tpu.matmul %31, %29, %cst_18 {dimension_numbers = #tpu.dot_dimension_numbers<[1], [0], [0], [1], [0, 0, 1, 1], [], []>} : vector<8x128xf32>, vector<128x32xf32>, vector<8x32xf32> -> vector<8x32xf32>
    %33 = vector.broadcast %30 : vector<1x32xf32> to vector<8x32xf32>
    %34 = arith.addf %32, %33 : vector<8x32xf32>
    %cst_19 = arith.constant 0.000000e+00 : f32
    %35 = vector.broadcast %cst_19 : f32 to vector<8x32xf32>
    %36 = arith.maximumf %34, %35 : vector<8x32xf32>
    %c128 = arith.constant 128 : index
    %c0_20 = arith.constant 0 : index
    %37 = vector.load %arg4[%c128, %c0_20] : memref<160x128xbf16, #tpu.memory_space<vmem>>, vector<32x128xbf16>
    %38 = arith.extf %37 : vector<32x128xbf16> to vector<32x128xf32>
    %c3 = arith.constant 3 : index
    %c0_21 = arith.constant 0 : index
    %39 = vector.load %arg5[%c3, %c0_21] : memref<24x256xf32, #tpu.memory_space<vmem>>, vector<1x128xf32>
    %cst_22 = arith.constant dense<0.000000e+00> : vector<8x128xf32>
    %40 = tpu.matmul %36, %38, %cst_22 {dimension_numbers = #tpu.dot_dimension_numbers<[1], [0], [0], [1], [0, 0, 1, 1], [], []>} : vector<8x32xf32>, vector<32x128xf32>, vector<8x128xf32> -> vector<8x128xf32>
    %41 = vector.broadcast %39 : vector<1x128xf32> to vector<8x128xf32>
    %42 = arith.addf %40, %41 : vector<8x128xf32>
    %43 = arith.negf %42 : vector<8x128xf32>
    %44 = math.exp %43 : vector<8x128xf32>
    %cst_23 = arith.constant 1.000000e+00 : f32
    %45 = vector.broadcast %cst_23 : f32 to vector<8x128xf32>
    %46 = arith.addf %45, %44 : vector<8x128xf32>
    %47 = arith.divf %45, %46 : vector<8x128xf32>
    %c0_24 = arith.constant 0 : index
    %c0_25 = arith.constant 0 : index
    %48 = vector.load %arg6[%c0_24, %c0_25] : memref<8x128xf32, #tpu.memory_space<vmem>>, vector<8x128xf32>
    tpu.vector_store %arg6[%c0_24, %c0_25], %47 {strides = array<i32>} : memref<8x128xf32, #tpu.memory_space<vmem>>, vector<8x128xf32>,
    return
  }
  func.func @transform_0(%arg0: i32) -> (i32, i32) {
    %c0_i32 = arith.constant 0 : i32
    %c0_i32_0 = arith.constant 0 : i32
    return %arg0, %c0_i32 : i32, i32
  }
  func.func @transform_1(%arg0: i32) -> (i32, i32) {
    %c0_i32 = arith.constant 0 : i32
    %c0_i32_0 = arith.constant 0 : i32
    %c0_i32_1 = arith.constant 0 : i32
    return %c0_i32, %c0_i32_0 : i32, i32
  }
  func.func @transform_2(%arg0: i32) -> (i32, i32) {
    %c0_i32 = arith.constant 0 : i32
    %c0_i32_0 = arith.constant 0 : i32
    %c0_i32_1 = arith.constant 0 : i32
    return %c0_i32, %c0_i32_0 : i32, i32
  }
  func.func @transform_3(%arg0: i32) -> (i32, i32) {
    %c0_i32 = arith.constant 0 : i32
    %c0_i32_0 = arith.constant 0 : i32
    %c0_i32_1 = arith.constant 0 : i32
    return %c0_i32, %c0_i32_0 : i32, i32
  }
  func.func @transform_4(%arg0: i32) -> (i32, i32) {
    %c0_i32 = arith.constant 0 : i32
    %c0_i32_0 = arith.constant 0 : i32
    %c0_i32_1 = arith.constant 0 : i32
    return %c0_i32, %c0_i32_0 : i32, i32
  }
  func.func @transform_5(%arg0: i32) -> (i32, i32) {
    %c0_i32 = arith.constant 0 : i32
    %c0_i32_0 = arith.constant 0 : i32
    return %arg0, %c0_i32 : i32, i32
  }
}

</mosaic_0001>

<bundles_post_ra>
// kernel: cgc_forward.1
= control target key start
LH: loop header
LB: loop body
LE: loop exit
PB: predicated region body
PF: predicated region fallthrough
CT: control target
= control target key end

     0   :  { %10 = vsyncpa [#allocation3], 0  ;;  %s1253_s0 = inlined_call_operand.hbm [shape: f32[8,16], index: 0, kind: input, shape index: {}]   ;;  %s1254_s1 = inlined_call_operand.hbm [shape: bf16[16,200], index: 1, kind: input, shape index: {}]   ;;  %s1255_s2 = inlined_call_operand.hbm [shape: bf16[200,256], index: 2, kind: input, shape index: {}]   ;;  %s1256_s3 = inlined_call_operand.hbm [shape: bf16[160,128], index: 3, kind: input, shape index: {}]   ;;  %s1257_s4 = inlined_call_operand.hbm [shape: f32[24,256], index: 4, kind: input, shape index: {}]   ;;  %s1258_s5 = inlined_call_operand.vmem [shape: f32[8,128], index: 5, kind: output, shape index: {}]  }
   0x1   :  { %11 = vsyncpa [#allocation5], 0 }
   0x2   :  { %12 = vsyncpa [#allocation8], 0  ;;  %s1122_s18 = smov [#allocation4]   ;;  %s1006_s22 = scalar_lea.hbm %s1254_s1, 256 }
   0x3   :  { %s28_s19 = sshll.u32 %s1122_s18, 4  ;;  %p1007_p0 = scmp.ne.s32.totalorder %s1254_s1, %s1006_s22  ;;  %s29_s19 = int_to_ptr.vmem [resolvable:$true] %s28_s19 }
   0x4   :  { %p1010_p1 = scmp.lt.u32.totalorder %s1006_s22, %s1254_s1 }
   0x6   :  { %p1012_p2 = pnand %p1010_p1, %p1007_p0 }
   0x8   :  { %1015 = shalt.err (!%p1012_p2)
}
   0x9   :  { %s1016_s27 = scalar_lea.vmem %s29_s19, 256  ;;  %p1021_p4 = scmp.lt.s32.totalorder %s29_s19, %s29_s19 }
   0xa   :  { %p1017_p3 = scmp.ne.s32.totalorder %s29_s19, %s1016_s27  ;;  %p1022_p5 = scmp.lt.s32.totalorder %s1016_s27, %s1016_s27 }
   0xc   :  { %p1023_p6 = por %p1022_p5, %p1021_p4 }
   0xe   :  { %p1024_p7 = pnand %p1023_p6, %p1017_p3 }
  0x10   :  { %1027 = shalt.err (!%p1024_p7)
}
  0x11   :  { %s1123_s28 = smov 128   ;;  %s1124_s29 = smov 8  }
  0x12   :  { %34 = dma.hbm_to_vmem [thread:$0]  %s1254_s1, 256, %s29_s19, [#allocation5], %s1123_s28, %s1123_s28, %s1124_s29  }
  0x13   :  { %s1125_s7 = smov [#allocation7]   ;;  %s1028_s11 = scalar_lea.hbm %s1256_s3, 1280 }
  0x14   :  { %s52_s8 = sshll.u32 %s1125_s7, 4  ;;  %p1029_p8 = scmp.ne.s32.totalorder %s1256_s3, %s1028_s11  ;;  %s53_s8 = int_to_ptr.vmem [resolvable:$true] %s52_s8 }
  0x15   :  { %p1032_p9 = scmp.lt.u32.totalorder %s1028_s11, %s1256_s3 }
  0x17   :  { %p1034_p10 = pnand %p1032_p9, %p1029_p8 }
  0x19   :  { %1037 = shalt.err (!%p1034_p10)
}
  0x1a   :  { %s1038_s16 = scalar_lea.vmem %s53_s8, 1280  ;;  %p1043_p12 = scmp.lt.s32.totalorder %s53_s8, %s53_s8 }
  0x1b   :  { %p1039_p11 = scmp.ne.s32.totalorder %s53_s8, %s1038_s16  ;;  %p1044_p13 = scmp.lt.s32.totalorder %s1038_s16, %s1038_s16 }
  0x1d   :  { %p1045_p0 = por %p1044_p13, %p1043_p12 }
  0x1f   :  { %p1046_p1 = pnand %p1045_p0, %p1039_p11 }
  0x21   :  { %1049 = shalt.err (!%p1046_p1)
}
  0x22   :  { %s1126_s1 = smov 64   ;;  %s1127_s17 = smov 4  }
  0x23   :  { %58 = dma.hbm_to_vmem [thread:$0]  %s1256_s3, 1280, %s53_s8, [#allocation8], %s1126_s1, %s1126_s1, %s1127_s17  }
  0x24   :  { %s1128_s20 = smov [#allocation2]   ;;  %s1129_s22 = smov [#allocation6]  }
  0x25   :  { %s19_s21 = sshll.u32 %s1128_s20, 4  ;;  %s40_s23 = sshll.u32 %s1129_s22, 4  ;;  %s20_s21 = int_to_ptr.vmem [resolvable:$true] %s19_s21  ;;  %s1193_s23 = int_to_ptr.vmem [resolvable:$true] %s40_s23 }
  0x26   :  { %s1050_s26 = scalar_lea.hbm %s1253_s0, 128 }
  0x27   :  { %p1051_p2 = scmp.ne.s32.totalorder %s1253_s0, %s1050_s26  ;;  %p1054_p3 = scmp.lt.u32.totalorder %s1050_s26, %s1253_s0 }
  0x29   :  { %p1056_p4 = pnand %p1054_p3, %p1051_p2 }
  0x2b   :  { %1059 = shalt.err (!%p1056_p4)
}
  0x2c   :  { %s1060_s3 = scalar_lea.vmem %s20_s21, 128  ;;  %p1065_p6 = scmp.lt.s32.totalorder %s20_s21, %s20_s21 }
  0x2d   :  { %p1061_p5 = scmp.ne.s32.totalorder %s20_s21, %s1060_s3  ;;  %p1066_p7 = scmp.lt.s32.totalorder %s1060_s3, %s1060_s3 }
  0x2f   :  { %p1067_p8 = por %p1066_p7, %p1065_p6 }
  0x31   :  { %p1068_p9 = pnand %p1067_p8, %p1061_p5 }
  0x33   :  { %1071 = shalt.err (!%p1068_p9)
}
  0x34   :  { %22 = dma.hbm_to_vmem [thread:$0]  %s1253_s0, 128, %s20_s21, [#allocation3]  }
  0x35   :  { %s1072_s12 = scalar_lea.hbm %s1255_s2, 3200 }
  0x36   :  { %p1073_p10 = scmp.ne.s32.totalorder %s1255_s2, %s1072_s12  ;;  %p1076_p11 = scmp.lt.u32.totalorder %s1072_s12, %s1255_s2 }
  0x38   :  { %p1078_p12 = pnand %p1076_p11, %p1073_p10 }
  0x3a   :  { %1081 = shalt.err (!%p1078_p12)
}
  0x3b   :  { %s1082_s1 = scalar_lea.vmem %s1193_s23, 3200  ;;  %p1087_p0 = scmp.lt.s32.totalorder %s1193_s23, %s1193_s23 }
  0x3c   :  { %p1083_p13 = scmp.ne.s32.totalorder %s1193_s23, %s1082_s1  ;;  %p1088_p1 = scmp.lt.s32.totalorder %s1082_s1, %s1082_s1 }
  0x3e   :  { %p1089_p2 = por %p1088_p1, %p1087_p0 }
  0x40   :  { %p1090_p3 = pnand %p1089_p2, %p1083_p13 }
  0x42   :  { %1093 = shalt.err (!%p1090_p3)
}
  0x43   :  { %46 = dma.hbm_to_vmem [thread:$0]  %s1255_s2, 3200, %s1193_s23, [#allocation5], %s1123_s28, %s1123_s28, %s1124_s29  }
  0x44   :  { %s1130_s18 = smov [#allocation9]   ;;  %s1094_s22 = scalar_lea.hbm %s1257_s4, 768 }
  0x45   :  { %s64_s19 = sshll.u32 %s1130_s18, 4  ;;  %p1095_p4 = scmp.ne.s32.totalorder %s1257_s4, %s1094_s22  ;;  %s65_s19 = int_to_ptr.vmem [resolvable:$true] %s64_s19 }
  0x46   :  { %p1098_p5 = scmp.lt.u32.totalorder %s1094_s22, %s1257_s4 }
  0x48   :  { %p1100_p6 = pnand %p1098_p5, %p1095_p4 }
  0x4a   :  { %1103 = shalt.err (!%p1100_p6)
}
  0x4b   :  { %s1104_s30 = scalar_lea.vmem %s65_s19, 768  ;;  %p1109_p8 = scmp.lt.s32.totalorder %s65_s19, %s65_s19 }
  0x4c   :  { %p1105_p7 = scmp.ne.s32.totalorder %s65_s19, %s1104_s30  ;;  %p1110_p9 = scmp.lt.s32.totalorder %s1104_s30, %s1104_s30 }
  0x4e   :  { %p1111_p10 = por %p1110_p9, %p1109_p8 }
  0x50   :  { %p1112_p11 = pnand %p1111_p10, %p1105_p7 }
  0x52   :  { %1115 = shalt.err (!%p1112_p11)
}
  0x53   :  { %s1131_s2 = smov 256   ;;  %s1132_s28 = smov 16  }
  0x54   :  { %70 = dma.hbm_to_vmem [thread:$0]  %s1257_s4, 768, %s65_s19, [#allocation8], %s1131_s2, %s1131_s2, %s1132_s28  }
  0x55   :  { %1116 = dma.done.wait [#allocation3], 128  }
  0x56   :  { %1117 = vsyncadd [#allocation3], 4294967168 }
  0x57   :  { %1118 = dma.done.wait [#allocation5], 3456  }
  0x58   :  { %1119 = vsyncadd [#allocation5], 4294963840 }
  0x59   :  { %1120 = dma.done.wait [#allocation8], 2048  }
  0x5a   :  { %1121 = vsyncadd [#allocation8], 4294965248  ;;  %v1133_v0 = vmov 0.0   ;;  %v959_v1 = vld [vmem:[#allocation4 + $0x4] ss:$8 sps:$4 sm:$0xff]   ;;  %v86_v3 = vld [vmem:[#allocation2] sm:$0xff]  ;;  %v95_v32 = vlaneseq }
  0x5b   :  { %173 = vmatprep.mubr.f32.mxu1 %v1133_v0  ;;  %v961_v2 = vld [vmem:[#allocation4] ss:$8 sps:$4 sm:$0xff]   ;;  %838 = vmatprep.subr.bf16.mxu1 %v959_v1  ;;  %v962_v4 = vld [vmem:[#allocation6 + $0x4] ss:$8 sps:$4 sm:$0xff]   ;;  %v964_v5 = vld [vmem:[#allocation6] ss:$8 sps:$4 sm:$0xff]  }
  0x5c   :  { %840 = vmatpush1.bf16.msra.mxu1 %v961_v2  ;;  %vm105_vm0 = vcmask 130048   ;;  %v965_v6 = vld [vmem:[#allocation6 + $0x14] ss:$8 sps:$4 sm:$0xff]   ;;  %842 = vmatprep.subr.bf16.mxu0 %v962_v4  ;;  %v967_v7 = vld [vmem:[#allocation6 + $0x10] ss:$8 sps:$4 sm:$0xff]   ;;  %v356_v28 = vld [vmem:[#allocation6 + $0xc0] sm:$0xff] }
  0x5d   :  { %781 = vmatprep.subr.mxu1 %v1133_v0  ;;  %844 = vmatpush1.bf16.msra.mxu0 %v964_v5  ;;  %v968_v8 = vld [vmem:[#allocation6 + $0x24] ss:$8 sps:$4 sm:$0xff]   ;;  %v970_v9 = vld [vmem:[#allocation6 + $0x20] ss:$8 sps:$4 sm:$0xff]   ;;  %v971_v10 = vld [vmem:[#allocation6 + $0x34] ss:$8 sps:$4 sm:$0xff]   ;;  %v406_v29 = vunpack.c.h.bf16 %v356_v28  ;;  %v405_v30 = vunpack.c.l.bf16 %v356_v28 }
  0x5e   :  { %846 = vmatprep.subr.bf16.mxu0 %v965_v6  ;;  %v973_v11 = vld [vmem:[#allocation6 + $0x30] ss:$8 sps:$4 sm:$0xff]   ;;  %v974_v12 = vld [vmem:[#allocation6 + $0x44] ss:$8 sps:$4 sm:$0xff]   ;;  %v976_v13 = vld [vmem:[#allocation6 + $0x40] ss:$8 sps:$4 sm:$0xff]  }
  0x5f   :  { %700 = vmatmul.mubr.msk.f32.vlgmr.msra.gmra.mrb[0].mxu1 %vm105_vm0, %v86_v3  ;;  %v977_v14 = vld [vmem:[#allocation6 + $0x54] ss:$8 sps:$4 sm:$0xff]   ;;  %v979_v15 = vld [vmem:[#allocation6 + $0x50] ss:$8 sps:$4 sm:$0xff]   ;;  %v980_v16 = vld [vmem:[#allocation6 + $0x64] ss:$8 sps:$4 sm:$0xff]  }
  0x60   :  { %v982_v17 = vld [vmem:[#allocation6 + $0x60] ss:$8 sps:$4 sm:$0xff]   ;;  %v983_v18 = vld [vmem:[#allocation6 + $0x74] ss:$8 sps:$4 sm:$0xff]   ;;  %v985_v19 = vld [vmem:[#allocation6 + $0x70] ss:$8 sps:$4 sm:$0xff]  }
  0x61   :  { %848 = vmatpush1.bf16.msra.mxu0 %v967_v7  ;;  %v986_v20 = vld [vmem:[#allocation6 + $0x84] ss:$8 sps:$4 sm:$0xff]   ;;  %v988_v21 = vld [vmem:[#allocation6 + $0x80] ss:$8 sps:$4 sm:$0xff]   ;;  %v989_v22 = vld [vmem:[#allocation6 + $0x94] ss:$8 sps:$4 sm:$0xff]  }
  0x62   :  { %850 = vmatprep.subr.bf16.mxu0 %v968_v8  ;;  %v991_v23 = vld [vmem:[#allocation6 + $0x90] ss:$8 sps:$4 sm:$0xff]   ;;  %v992_v24 = vld [vmem:[#allocation6 + $0xa4] ss:$8 sps:$4 sm:$0xff]   ;;  %v994_v25 = vld [vmem:[#allocation6 + $0xa0] ss:$8 sps:$4 sm:$0xff]  }
  0x63   :  { %v995_v26 = vld [vmem:[#allocation6 + $0xb4] ss:$8 sps:$4 sm:$0xff]   ;;  %v997_v27 = vld [vmem:[#allocation6 + $0xb0] ss:$8 sps:$4 sm:$0xff]   ;;  %v184_v31 = vld [vmem:[#allocation9 + $0x10] sm:$0xff]  ;;  %vm1134_vm1 = vmmov 0  }
  0x64   :  { %782 = vmatpush3.msra.mxu1 %v184_v31  ;;  %783 = vmatprep.mubr.msk.f32.mxu1 %vm1134_vm1, %v1133_v0  ;;  %v96_v33 = vshrl.u32 %v95_v32, 7  ;;  %v93_v35 = vld [vmem:[#allocation9] ss:$8 sm:$0x3]  ;;  %vm420_vm2 = vcmask 588800   ;;  %vm185_vm3 = vcmask 64512  }
  0x65   :  { %852 = vmatpush1.bf16.msra.mxu0 %v970_v9  ;;  %786 = vmatprep.subr.mxu1 %v1133_v0  ;;  %v259_v46 = vld [vmem:[#allocation9 + $0x20] sm:$0xff]  ;;  %v1135_v48 = vmov 0.0|0.0   ;;  %v707_v49 = vld [vmem:[#allocation7] sm:$0xff]   ;;  %v746_v50 = vld [vmem:[#allocation7 + $0x8] sm:$0xff]   ;;  %vm612_vm4 = vcmask 261120  }
  0x66   :  { %854 = vmatprep.subr.bf16.mxu0 %v971_v10  ;;  %v97_v34 = vsub.s32 0, %v96_v33  ;;  %v101_v36 = vsub.s32 1, %v96_v33  ;;  %v747_v51 = vld [vmem:[#allocation7 + $0x10] sm:$0xff]   ;;  %v748_v52 = vld [vmem:[#allocation7 + $0x18] sm:$0xff]   ;;  %v749_v53 = vld [vmem:[#allocation7 + $0x20] sm:$0xff]  }
  0x67   :  { %v750_v54 = vld [vmem:[#allocation7 + $0x28] sm:$0xff]   ;;  %v751_v55 = vld [vmem:[#allocation7 + $0x30] sm:$0xff]   ;;  %v752_v56 = vld [vmem:[#allocation7 + $0x38] sm:$0xff]  }
  0x68   :  { %v98_v37 = vrot.slane %v93_v35, %v97_v34  ;;  %v102_v38 = vrot.slane %v93_v35, %v101_v36  ;;  %v408_v57 = vld [vmem:[#allocation9 + $0x1] ss:$8 sm:$0x3] }
  0x69   :  { %856 = vmatpush1.bf16.msra.mxu0 %v973_v11  ;;  %v413_v58 = vrot.slane %v408_v57, %v97_v34  ;;  %v417_v59 = vrot.slane %v408_v57, %v101_v36  ;;  %v753_v11 = vld [vmem:[#allocation7 + $0x40] sm:$0xff]  }
  0x6a   :  { %858 = vmatprep.subr.bf16.mxu0 %v974_v12  ;;  %v754_v12 = vld [vmem:[#allocation7 + $0x48] sm:$0xff]  }
  0x6d   :  { %860 = vmatpush1.bf16.msra.mxu0 %v976_v13  ;;  %v530_v13 = vld [vmem:[#allocation9 + $0x2] ss:$0 sm:$0xff] }
  0x6e   :  { %862 = vmatprep.subr.bf16.mxu0 %v977_v14 }
  0x71   :  { %864 = vmatpush1.bf16.msra.mxu0 %v979_v15 }
  0x72   :  { %866 = vmatprep.subr.bf16.mxu0 %v980_v16 }
  0x75   :  { %868 = vmatpush1.bf16.msra.mxu0 %v982_v17 }
  0x76   :  { %870 = vmatprep.subr.bf16.mxu0 %v983_v18  ;;  %v611_v18 = vld [vmem:[#allocation9 + $0x3] ss:$0 sm:$0xff] }
  0x79   :  { %872 = vmatpush1.bf16.msra.mxu0 %v985_v19 }
  0x7a   :  { %874 = vmatprep.subr.bf16.mxu0 %v986_v20 }
  0x7d   :  { %876 = vmatpush1.bf16.msra.mxu0 %v988_v21 }
  0x7e   :  { %878 = vmatprep.subr.bf16.mxu0 %v989_v22 }
  0x81   :  { %880 = vmatpush1.bf16.msra.mxu0 %v991_v23 }
  0x82   :  { %882 = vmatprep.subr.bf16.mxu0 %v992_v24 }
  0x85   :  { %884 = vmatpush1.bf16.msra.mxu0 %v994_v25 }
  0x86   :  { %886 = vmatprep.subr.bf16.mxu0 %v995_v26 }
  0x89   :  { %888 = vmatpush1.bf16.msra.mxu0 %v997_v27 }
  0x8a   :  { %472 = vmatprep.subr.mxu0 %v406_v29 }
  0x8d   :  { %473 = vmatpush1.msra.mxu0 %v405_v30 }
 0x132   :  { %v175_v39 = vpop.f32.mrb[0].mxu1 }
 0x133   :  { %v176_v40 = vadd.f32 %v175_v39, %v98_v37  ;;  %v177_v41 = vpop.f32.mrb[1].mxu1 }
 0x134   :  { %v178_v42 = vadd.f32 %v177_v41, %v102_v38 }
 0x135   :  { %v180_v43 = vmax.f32 %v176_v40, 0.0 }
 0x136   :  { %v181_v44 = vmax.f32 %v178_v42, 0.0 }
 0x137   :  { %v182_v45 = vmul.f32 1.442695, %v180_v43 }
 0x138   :  { %703 = vmatprep.mubr.msk.f32.mxu0 %vm420_vm2, %v181_v44 }
 0x139   :  { %998 = vpow2.f32 %v182_v45  ;;  %489 = vmatmul.mubr.f32.vlgmr.msra.gmra.mrb[0].mxu0 %v180_v43 }
 0x143   :  { %v999_v47 = vpop.eup %998 }
 0x144   :  { %784 = vmatmul.mubr.msk.f32.vlgmr.msra.gmra.mrb[2].mxu1 %vm185_vm3, %v999_v47 }
 0x145   :  { %787 = vmatpush3.msra.mxu1 %v259_v46  ;;  %788 = vmatprep.mubr.msk.f32.mxu1 %vm1134_vm1, %v1133_v0 }
 0x146   :  { %889 = vmatprep.subr.bf16.mxu1 %v1135_v48 }
 0x148   :  { %789 = vmatmul.mubr.msk.f32.vlgmr.msra.gmra.mrb[4].mxu1 %vm185_vm3, %v999_v47 }
 0x149   :  { %823 = vmatprep.mubr.msk.f32.mxu1 %vm1134_vm1, %v1133_v0  ;;  %891 = vmatpush3.bf16.msra.mxu1 %v707_v49 }
 0x14a   :  { %892 = vmatprep.subr.bf16.mxu1 %v1135_v48 }
 0x14d   :  { %894 = vmatpush3.bf16.msra.mxu1 %v746_v50 }
 0x14e   :  { %895 = vmatprep.subr.bf16.mxu1 %v1135_v48 }
 0x151   :  { %897 = vmatpush3.bf16.msra.mxu1 %v747_v51 }
 0x152   :  { %898 = vmatprep.subr.bf16.mxu1 %v1135_v48 }
 0x155   :  { %900 = vmatpush3.bf16.msra.mxu1 %v748_v52 }
 0x156   :  { %901 = vmatprep.subr.bf16.mxu1 %v1135_v48 }
 0x159   :  { %903 = vmatpush3.bf16.msra.mxu1 %v749_v53 }
 0x15a   :  { %904 = vmatprep.subr.bf16.mxu1 %v1135_v48 }
 0x15d   :  { %906 = vmatpush3.bf16.msra.mxu1 %v750_v54 }
 0x15e   :  { %907 = vmatprep.subr.bf16.mxu1 %v1135_v48 }
 0x161   :  { %909 = vmatpush3.bf16.msra.mxu1 %v751_v55 }
 0x162   :  { %910 = vmatprep.subr.bf16.mxu1 %v1135_v48 }
 0x165   :  { %912 = vmatpush3.bf16.msra.mxu1 %v752_v56 }
 0x166   :  { %913 = vmatprep.subr.bf16.mxu1 %v1135_v48 }
 0x20c   :  { %v490_v60 = vpop.f32.mrb[0].mxu0 }
 0x20d   :  { %v491_v61 = vadd.f32 %v490_v60, %v413_v58  ;;  %v492_v62 = vpop.f32.mrb[1].mxu0 }
 0x20e   :  { %v493_v63 = vadd.f32 %v492_v62, %v417_v59 }
 0x20f   :  { %v495_v1 = vmax.f32 %v491_v61, 0.0 }
 0x210   :  { %v496_v2 = vmax.f32 %v493_v63, 0.0 }
 0x212   :  { %v497_v3 = vadd.f32 %v496_v2, %v495_v1 }
 0x217   :  { %v255_v4 = vpop.f32.mrb[2].mxu1 }
 0x218   :  { %v785_v5 = vpop.f32.mrb[3].mxu1 }
 0x21b   :  { %v326_v6 = vpop.f32.mrb[4].mxu1 }
 0x21c   :  { %1000 = vrcp.f32 %v326_v6  ;;  %v790_v7 = vpop.f32.mrb[5].mxu1 }
 0x226   :  { %v1001_v8 = vpop.eup %1000 }
 0x227   :  { %v331_v9 = vmul.f32 %v1001_v8, %v255_v4 }
 0x229   :  { %v531_v10 = vmul.f32 %v497_v3, %v331_v9 }
 0x22b   :  { %824 = vmatmul.mubr.f32.vlgmr.msra.gmra.mrb[6].mxu1 %v531_v10 }
 0x22c   :  { %915 = vmatpush3.bf16.msra.mxu1 %v753_v11  ;;  %834 = vmatprep.mubr.msk.f32.mxu1 %vm1134_vm1, %v1133_v0 }
 0x22d   :  { %916 = vmatprep.subr.bf16.mxu1 %v1135_v48 }
 0x230   :  { %918 = vmatpush3.bf16.msra.mxu1 %v754_v12 }
 0x2fe   :  { %v598_v14 = vpop.f32.mrb[6].mxu1 }
 0x2ff   :  { %v599_v15 = vadd.f32 %v598_v14, %v530_v13  ;;  %v825_v16 = vpop.f32.mrb[7].mxu1 }
 0x301   :  { %v602_v17 = vmax.f32 %v599_v15, 0.0 }
 0x303   :  { %835 = vmatmul.mubr.msk.f32.vlgmr.msra.gmra.mrb[8].mxu1 %vm612_vm4, %v602_v17 }
 0x3d6   :  { %v682_v19 = vpop.f32.mrb[8].mxu1 }
 0x3d7   :  { %v683_v20 = vadd.f32 %v682_v19, %v611_v18  ;;  %v836_v21 = vpop.f32.mrb[9].mxu1 }
 0x3d9   :  { %v705_v22 = vmul.f32 -1.442695, %v683_v20 }
 0x3db   :  { %1002 = vpow2.f32 %v705_v22 }
 0x3e5   :  { %v1003_v23 = vpop.eup %1002 }
 0x3e6   :  { %v689_v24 = vadd.f32 1.0, %v1003_v23 }
 0x3e8   :  { %1004 = vrcp.f32 %v689_v24 }
 0x3f2   :  { %v1005_v0 = vpop.eup %1004 }
 0x3f3   :  { %692 = vst [vmem:[%s1258_s5] sm:$0xff] %v1005_v0 }
 0x3f4   :  { %697 = vsyncpa [#allocation3], 1 }
 0x3f5   :  { %698 = vsyncpa [#allocation5], 1 }
 0x3f6   :  { %699 = vsyncpa [#allocation8], 1 }

</bundles_post_ra>
